<compile_context>
chip_gen: v6e
topology: v6e:2x2x1
jax: 0.10.0
libtpu: 0.0.40
codegen_flags: <defaults>
</compile_context>

<pallas_src>
import jax
import jax.numpy as jnp
from jax.experimental import pallas as pl
from jax.experimental.pallas import tpu as pltpu

IN_DIM = 10        # net1 in_features
HID_DIM = 10       # net1 out_features / net2 in_features
OUT_DIM = 2        # net2 out_features
NPAD = 128         # lane-dense padded output width
W2_ROW = 16        # sublane-aligned row offset of w2 inside the fused param slab
PARAM_ROWS = 32    # fused parameter slab rows
DEFAULT_TILE_B = 1024  # 512-2048 recommended; comfortably under v7x 32 MiB / v5e 16 MiB scoped VMEM


def _round_up(n: int, m: int) -> int:
    return (n + m - 1) // m * m


def mlp_kernel(x_ref, p_ref, o_ref):
    # Static slices of the resident parameter slab (zero-cost ref views).
    w1 = p_ref[pl.ds(0, IN_DIM), pl.ds(0, HID_DIM)]           # (10, 10)  f32
    b1 = p_ref[pl.ds(IN_DIM, 1), pl.ds(0, HID_DIM)]           # (1, 10)   f32
    w2 = p_ref[pl.ds(W2_ROW, HID_DIM), :]                     # (10, 128) f32, cols >= OUT_DIM are zero
    b2 = p_ref[pl.ds(W2_ROW + HID_DIM, 1), :]                 # (1, 128)  f32, cols >= OUT_DIM are zero

    x = x_ref[...]                                            # (tile_b, 10) bf16
    # Hidden layer on the MXU: bf16 inputs, f32 accumulation.
    h = jnp.dot(x, w1.astype(jnp.bfloat16), preferred_element_type=jnp.float32)
    h = jnp.maximum(h + b1, 0.0)                              # bias + ReLU in f32 (VPU)
    # Output layer, lane-dense (tile_b, 128); zero padding columns stay exactly zero.
    y = jnp.dot(h.astype(jnp.bfloat16), w2.astype(jnp.bfloat16),
                preferred_element_type=jnp.float32)
    o_ref[...] = (y + b2).astype(o_ref.dtype)


def toy_model_forward(x, w1, b1, w2, b2, *, tile_b=DEFAULT_TILE_B):
    """x: (B, 10) f32; w1: (10, 10); b1: (1, 10) or (10,); w2: (10, 2); b2: (1, 2) or (2,)."""
    B = x.shape[0]

    # --- fuse the four parameters into one padded, lane-dense slab ---------------
    params = jnp.zeros((PARAM_ROWS, NPAD), jnp.float32)
    params = params.at[0:IN_DIM, 0:HID_DIM].set(w1.astype(jnp.float32))
    params = params.at[IN_DIM:IN_DIM + 1, 0:HID_DIM].set(jnp.reshape(b1, (1, HID_DIM)).astype(jnp.float32))
    params = params.at[W2_ROW:W2_ROW + HID_DIM, 0:OUT_DIM].set(w2.astype(jnp.float32))
    params = params.at[W2_ROW + HID_DIM:W2_ROW + HID_DIM + 1, 0:OUT_DIM].set(
        jnp.reshape(b2, (1, OUT_DIM)).astype(jnp.float32))

    # --- bf16 activations: MXU-native on v6e/v7x and half the HBM bytes for x ----
    x_bf16 = x.astype(jnp.bfloat16)

    # --- pick a batch tile and pad B to a whole number of tiles ------------------
    tb = _round_up(min(tile_b, _round_up(B, 16)), 16)
    b_pad = _round_up(B, tb)
    if b_pad != B:
        x_bf16 = jnp.pad(x_bf16, ((0, b_pad - B), (0, 0)))
    grid = (b_pad // tb,)

    out_padded = pl.pallas_call(
        mlp_kernel,
        out_shape=jax.ShapeDtypeStruct((b_pad, NPAD), jnp.float32),
        grid_spec=pltpu.PrefetchScalarGridSpec(
            num_scalar_prefetch=0,
            grid=grid,
            in_specs=[
                pl.BlockSpec((tb, IN_DIM), lambda i: (i, 0)),        # batch-tiled x
                pl.BlockSpec((PARAM_ROWS, NPAD), lambda i: (0, 0)),  # resident fused params
            ],
            out_specs=pl.BlockSpec((tb, NPAD), lambda i: (i, 0)),    # lane-dense output
        ),
        compiler_params=pltpu.CompilerParams(
            dimension_semantics=("parallel",),  # independent batch tiles -> megacore sharding
        ),
        cost_estimate=pl.CostEstimate(
            flops=2 * b_pad * (IN_DIM * HID_DIM + HID_DIM * NPAD),
            transcendentals=0,
            bytes_accessed=(b_pad * IN_DIM * 2          # x (bf16)
                            + b_pad * NPAD * 4          # padded output (f32)
                            + PARAM_ROWS * NPAD * 4),   # fused params (f32)
        ),
    )(x_bf16, params)

    # Slice back to the module's (B, 2) output.
    return out_padded[:B, :OUT_DIM]


def init_params(key):
    """Deterministic init mimicking nn.Linear's uniform(-1/sqrt(fan_in), 1/sqrt(fan_in))."""
    k1, k2, k3, k4 = jax.random.split(key, 4)
    bound = 1.0 / jnp.sqrt(10.0)
    w1 = jax.random.uniform(k1, (IN_DIM, HID_DIM), jnp.float32, -bound, bound)
    b1 = jax.random.uniform(k2, (1, HID_DIM), jnp.float32, -bound, bound)
    w2 = jax.random.uniform(k3, (HID_DIM, OUT_DIM), jnp.float32, -bound, bound)
    b2 = jax.random.uniform(k4, (1, OUT_DIM), jnp.float32, -bound, bound)
    return w1, b1, w2, b2


def reference_forward(x, w1, b1, w2, b2):
    # Matches the kernel's numerics: bf16 MXU inputs, f32 accumulation / elementwise.
    xb = x.astype(jnp.bfloat16).astype(jnp.float32)
    w1b = w1.astype(jnp.bfloat16).astype(jnp.float32)
    w2b = w2.astype(jnp.bfloat16).astype(jnp.float32)
    h = jnp.maximum(xb @ w1b + b1, 0.0)
    hb = h.astype(jnp.bfloat16).astype(jnp.float32)
    return hb @ w2b + b2


if __name__ == "__main__":
    key = jax.random.PRNGKey(0)
    k_x, k_p = jax.random.split(key)
    w1, b1, w2, b2 = init_params(k_p)

    # Small single-tile batch.
    B = 8
    x = jax.random.normal(k_x, (B, IN_DIM), jnp.float32)
    out = jax.block_until_ready(toy_model_forward(x, w1, b1, w2, b2))
    ref = reference_forward(x, w1, b1, w2, b2)
    assert out.shape == (B, OUT_DIM)
    assert jnp.allclose(out, ref, atol=1e-4, rtol=1e-4)

    # Exercise the multi-tile grid + batch-padding path with a tiny tile (grid=(3,)).
    B2 = 40
    x2 = jax.random.normal(k_x, (B2, IN_DIM), jnp.float32)
    out2 = jax.block_until_ready(toy_model_forward(x2, w1, b1, w2, b2, tile_b=16))
    ref2 = reference_forward(x2, w1, b1, w2, b2)
    assert out2.shape == (B2, OUT_DIM)
    assert jnp.allclose(out2, ref2, atol=1e-4, rtol=1e-4)

    print("KERNEL_OK")
</pallas_src>

<mosaic_0001>
module attributes {stable_mosaic.version = 11 : i64} {
  func.func @mlp_kernel(%arg0: i32, %arg1: memref<16x10xbf16, #tpu.memory_space<vmem>>, %arg2: memref<32x128xf32, #tpu.memory_space<vmem>>, %arg3: memref<16x128xf32, #tpu.memory_space<vmem>>) attributes {dimension_semantics = [#tpu.dimension_semantics<parallel>], iteration_bounds = array<i64: 1>, scalar_prefetch = 0 : i64, scratch_operands = 0 : i64, tpu.core_type = #tpu.core_type<tc>, window_params = [{transform_indices = @transform_0, window_bounds = array<i64: 16, 10>}, {pipeline_mode = #tpu.pipeline_mode<synchronous>, transform_indices = @transform_1, window_bounds = array<i64: 32, 128>}, {transform_indices = @transform_2, window_bounds = array<i64: 16, 128>}]} {
    %c0 = arith.constant 0 : index
    %c0_0 = arith.constant 0 : index
    %0 = vector.load %arg2[%c0, %c0_0] : memref<32x128xf32, #tpu.memory_space<vmem>>, vector<10x10xf32>
    %c10 = arith.constant 10 : index
    %c0_1 = arith.constant 0 : index
    %1 = vector.load %arg2[%c10, %c0_1] : memref<32x128xf32, #tpu.memory_space<vmem>>, vector<1x10xf32>
    %c16 = arith.constant 16 : index
    %c0_2 = arith.constant 0 : index
    %2 = vector.load %arg2[%c16, %c0_2] : memref<32x128xf32, #tpu.memory_space<vmem>>, vector<10x128xf32>
    %c26 = arith.constant 26 : index
    %c0_3 = arith.constant 0 : index
    %3 = vector.load %arg2[%c26, %c0_3] : memref<32x128xf32, #tpu.memory_space<vmem>>, vector<1x128xf32>
    %c0_4 = arith.constant 0 : index
    %c0_5 = arith.constant 0 : index
    %4 = vector.load %arg1[%c0_4, %c0_5] : memref<16x10xbf16, #tpu.memory_space<vmem>>, vector<16x10xbf16>
    %5 = arith.truncf %0 : vector<10x10xf32> to vector<10x10xbf16>
    %cst = arith.constant dense<0.000000e+00> : vector<16x10xf32>
    %6 = tpu.matmul %4, %5, %cst {dimension_numbers = #tpu.dot_dimension_numbers<[1], [0], [0], [1], [0, 0, 1, 1], [], []>} : vector<16x10xbf16>, vector<10x10xbf16>, vector<16x10xf32> -> vector<16x10xf32>
    %7 = vector.broadcast %1 : vector<1x10xf32> to vector<16x10xf32>
    %8 = arith.addf %6, %7 : vector<16x10xf32>
    %cst_6 = arith.constant 0.000000e+00 : f32
    %9 = vector.broadcast %cst_6 : f32 to vector<16x10xf32>
    %10 = arith.maximumf %8, %9 : vector<16x10xf32>
    %11 = arith.truncf %10 : vector<16x10xf32> to vector<16x10xbf16>
    %12 = arith.truncf %2 : vector<10x128xf32> to vector<10x128xbf16>
    %cst_7 = arith.constant dense<0.000000e+00> : vector<16x128xf32>
    %13 = tpu.matmul %11, %12, %cst_7 {dimension_numbers = #tpu.dot_dimension_numbers<[1], [0], [0], [1], [0, 0, 1, 1], [], []>} : vector<16x10xbf16>, vector<10x128xbf16>, vector<16x128xf32> -> vector<16x128xf32>
    %14 = vector.broadcast %3 : vector<1x128xf32> to vector<16x128xf32>
    %15 = arith.addf %13, %14 : vector<16x128xf32>
    %c0_8 = arith.constant 0 : index
    %c0_9 = arith.constant 0 : index
    %16 = vector.load %arg3[%c0_8, %c0_9] : memref<16x128xf32, #tpu.memory_space<vmem>>, vector<16x128xf32>
    tpu.vector_store %arg3[%c0_8, %c0_9], %15 {strides = array<i32>} : memref<16x128xf32, #tpu.memory_space<vmem>>, vector<16x128xf32>,
    return
  }
  func.func @transform_0(%arg0: i32) -> (i32, i32) {
    %c0_i32 = arith.constant 0 : i32
    %c0_i32_0 = arith.constant 0 : i32
    return %arg0, %c0_i32 : i32, i32
  }
  func.func @transform_1(%arg0: i32) -> (i32, i32) {
    %c0_i32 = arith.constant 0 : i32
    %c0_i32_0 = arith.constant 0 : i32
    %c0_i32_1 = arith.constant 0 : i32
    return %c0_i32, %c0_i32_0 : i32, i32
  }
  func.func @transform_2(%arg0: i32) -> (i32, i32) {
    %c0_i32 = arith.constant 0 : i32
    %c0_i32_0 = arith.constant 0 : i32
    return %arg0, %c0_i32 : i32, i32
  }
}

</mosaic_0001>

<bundles_post_ra>
// kernel: tpu_custom_call.1
= control target key start
LH: loop header
LB: loop body
LE: loop exit
PB: predicated region body
PF: predicated region fallthrough
CT: control target
= control target key end

     0   :  { %7 = vsyncpa [#allocation3], 0  ;;  %s321_s0 = inlined_call_operand.hbm [shape: bf16[16,10], index: 0, kind: input, shape index: {}]   ;;  %s322_s1 = inlined_call_operand.hbm [shape: f32[32,128], index: 1, kind: input, shape index: {}]   ;;  %s323_s2 = inlined_call_operand.hbm [shape: f32[16,128], index: 2, kind: output, shape index: {}]  }
   0x1   :  { %8 = vsyncpa [#allocation6], 0 }
   0x2   :  { %9 = vsyncpa [#allocation4], 0  ;;  %s280_s9 = smov [#allocation2]  }
   0x3   :  { %s15_s10 = sshll.u32 %s280_s9, 4  ;;  %s16_s10 = int_to_ptr.vmem [resolvable:$true] %s15_s10 }
   0x4   :  { %s222_s11 = scalar_lea.vmem %s16_s10, 128  ;;  %p227_p1 = scmp.lt.s32.totalorder %s16_s10, %s16_s10 }
   0x5   :  { %p223_p0 = scmp.ne.s32.totalorder %s16_s10, %s222_s11  ;;  %p228_p2 = scmp.lt.s32.totalorder %s222_s11, %s222_s11 }
   0x7   :  { %p229_p3 = por %p228_p2, %p227_p1 }
   0x9   :  { %p230_p4 = pnand %p229_p3, %p223_p0 }
   0xb   :  { %233 = shalt.err (!%p230_p4)
}
   0xc   :  { %s281_s12 = smov 64   ;;  %s282_s13 = smov 4  }
   0xd   :  { %21 = dma.hbm_to_vmem [thread:$0]  %s321_s0, 128, %s16_s10, [#allocation3], %s281_s12, %s281_s12, %s282_s13  }
   0xe   :  { %s283_s16 = smov [#allocation5]  }
   0xf   :  { %s27_s17 = sshll.u32 %s283_s16, 4  ;;  %s28_s17 = int_to_ptr.vmem [resolvable:$true] %s27_s17 }
  0x10   :  { %s242_s18 = scalar_lea.vmem %s28_s17, 512  ;;  %p247_p6 = scmp.lt.s32.totalorder %s28_s17, %s28_s17 }
  0x11   :  { %p243_p5 = scmp.ne.s32.totalorder %s28_s17, %s242_s18  ;;  %p248_p7 = scmp.lt.s32.totalorder %s242_s18, %s242_s18 }
  0x13   :  { %p249_p8 = por %p248_p7, %p247_p6 }
  0x15   :  { %p250_p9 = pnand %p249_p8, %p243_p5 }
  0x17   :  { %253 = shalt.err (!%p250_p9)
}
  0x18   :  { %s284_s19 = smov 128   ;;  %s285_s20 = smov 8  }
  0x19   :  { %33 = dma.hbm_to_vmem [thread:$0]  %s322_s1, 512, %s28_s17, [#allocation6], %s284_s19, %s284_s19, %s285_s20  }
  0x1a   :  { %274 = dma.done.wait [#allocation3], 128  }
  0x1b   :  { %275 = vsyncadd [#allocation3], 4294967168 }
  0x1c   :  { %276 = dma.done.wait [#allocation6], 512  }
  0x1d   :  { %277 = vsyncadd [#allocation6], 4294966784  ;;  %v286_v0 = vmov 0.0   ;;  %vm287_vm0 = vmmov 0   ;;  %v41_v1 = vld [vmem:[#allocation5] sm:$0xff]  ;;  %vm63_vm1 = vcmask 1044480  }
  0x1e   :  { %192 = vmatprep.subr.bf16.mxu0 %v286_v0  ;;  %194 = vmatprep.mubr.msk.bf16.mxu0 %vm287_vm0, %v286_v0  ;;  %v42_v2 = vld [vmem:[#allocation5 + $0x8] sm:$0x3]  ;;  %v213_v5 = vld [vmem:[#allocation2] sm:$0xff]   ;;  %vm59_vm2 = vcmask 80896   ;;  %v44_v6 = vld [vmem:[#allocation5 + $0x10] sm:$0xff]  ;;  %s288_s0 = smov [#allocation7]  }
  0x1f   :  { %198 = vmatprep.subr.bf16.mxu1 %v286_v0  ;;  %200 = vmatprep.mubr.msk.bf16.mxu1 %vm287_vm0, %v286_v0  ;;  %v49_v3 = vpack.c.bf16 %v42_v2, %v41_v1  ;;  %v45_v7 = vld [vmem:[#allocation5 + $0x18] sm:$0x3]  ;;  %v183_v10 = vld [vmem:[#allocation5 + $0xa] ss:$0 sm:$0xff]  ;;  %v186_v20 = vld [vmem:[#allocation5 + $0x1a] ss:$0 sm:$0xff] }
  0x20   :  { %v111_v8 = vpack.c.bf16 %v45_v7, %v44_v6  ;;  %s170_s1 = sshll.u32 %s288_s0, 4  ;;  %s171_s1 = int_to_ptr.vmem [resolvable:$true] %s170_s1 }
  0x21   :  { %v65_v4 = vsel %vm63_vm1, %v49_v3, 0  ;;  %s254_s23 = scalar_lea.vmem %s171_s1, 256  ;;  %p259_p11 = scmp.lt.s32.totalorder %s171_s1, %s171_s1 }
  0x22   :  { %193 = vmatpush3.bf16.msra.mxu0 %v65_v4  ;;  %v120_v9 = vsel %vm63_vm1, %v111_v8, 0  ;;  %p255_p10 = scmp.ne.s32.totalorder %s171_s1, %s254_s23  ;;  %p260_p12 = scmp.lt.s32.totalorder %s254_s23, %s254_s23 }
  0x23   :  { %199 = vmatpush3.bf16.msra.mxu1 %v120_v9 }
  0x24   :  { %p261_p13 = por %p260_p12, %p259_p11 }
  0x25   :  { %195 = vmatmul.mubr.msk.bf16.vlgmr.msra.gmra.mxu0 %vm59_vm2, %v213_v5 }
  0x26   :  { %p262_p0 = pnand %p261_p13, %p255_p10 }
  0xe5   :  { %v101_v11 = vpop.f32.mrf.mxu0 }
  0xe6   :  { %v102_v13 = vadd.f32 %v183_v10, %v101_v11 }
  0xe7   :  { %v196_v12 = vpop.f32.mrf.mxu0 }
  0xe8   :  { %v108_v17 = vmax.f32 %v102_v13, 0.0 }
  0xe9   :  { %v104_v14 = vpop.f32.mrf.mxu0 }
  0xea   :  { %v105_v15 = vadd.f32 %v183_v10, %v104_v14 }
  0xeb   :  { %v197_v16 = vpop.f32.mrf.mxu0 }
  0xec   :  { %v109_v18 = vmax.f32 %v105_v15, 0.0 }
  0xee   :  { %v110_v19 = vpack.c.bf16 %v109_v18, %v108_v17 }
  0xf0   :  { %201 = vmatmul.mubr.msk.bf16.vlgmr.msra.gmra.mxu1 %vm59_vm2, %v110_v19 }
 0x1b0   :  { %v156_v21 = vpop.f32.mrf.mxu1 }
 0x1b1   :  { %v157_v22 = vadd.f32 %v186_v20, %v156_v21 }
 0x1b2   :  { %v202_v23 = vpop.f32.mrf.mxu1 }
 0x1b3   :  { %163 = vst [vmem:[#allocation7] sm:$0xff] %v157_v22 }
 0x1b4   :  { %v159_v24 = vpop.f32.mrf.mxu1 }
 0x1b5   :  { %v160_v25 = vadd.f32 %v186_v20, %v159_v24 }
 0x1b6   :  { %v203_v26 = vpop.f32.mrf.mxu1 }
 0x1b7   :  { %164 = vst [vmem:[#allocation7 + $0x8] sm:$0xff] %v160_v25 }
 0x1b8   :  { %265 = shalt.err (!%p262_p0)
}
 0x1b9   :  { %176 = dma.vmem_to_hbm [thread:$0]  %s171_s1, 256, %s323_s2, [#allocation4], %s284_s19, %s284_s19, %s285_s20  }
 0x1ba   :  { %278 = dma.done.wait [#allocation4], 256  }
 0x1bb   :  { %279 = vsyncadd [#allocation4], 4294967040 }
 0x1bc   :  { %180 = vsyncpa [#allocation3], 1 }
 0x1bd   :  { %181 = vsyncpa [#allocation6], 1 }
 0x1be   :  { %182 = vsyncpa [#allocation4], 1 }

</bundles_post_ra>
